<compile_context>
chip_gen: v7x
topology: tpu7x:2x2x1
jax: 0.10.0
libtpu: 0.0.40
codegen_flags: <defaults>
</compile_context>

<pallas_src>
import functools

import jax
import jax.numpy as jnp
from jax.experimental import pallas as pl
from jax.experimental.pallas import tpu as pltpu

KSIZE = 7
PAD = KSIZE // 2


# ----------------------------------------------------------------------------
# Stage 1: channel mean / max reduction on a lane-dense (B, C, H*W) view.
# ----------------------------------------------------------------------------
def _reduce_kernel(x_ref, o_ref, *, inv_c):
    # x_ref: (Bt, Cc, HW) block of x (one channel chunk)
    # o_ref: (Bt, 2, HW) accumulator block, resident across the channel axis
    #        (same block index for every c); [:,0,:] running sum, [:,1,:] running max
    c = pl.program_id(1)
    nc = pl.num_programs(1)

    x = x_ref[...].astype(jnp.float32)
    s = jnp.sum(x, axis=1, keepdims=True)    # (Bt, 1, HW)
    m = jnp.max(x, axis=1, keepdims=True)    # (Bt, 1, HW)

    @pl.when(c == 0)
    def _():
        o_ref[:, 0:1, :] = s
        o_ref[:, 1:2, :] = m

    @pl.when(c > 0)
    def _():
        o_ref[:, 0:1, :] = o_ref[:, 0:1, :] + s
        o_ref[:, 1:2, :] = jnp.maximum(o_ref[:, 1:2, :], m)

    @pl.when(c == nc - 1)
    def _():
        # sum across all chunks -> mean (divide by the full C, bit-comparable path)
        o_ref[:, 0:1, :] = o_ref[:, 0:1, :] * inv_c


# ----------------------------------------------------------------------------
# Stage 2: zero-pad + 7x7 conv (2 -> 1, no bias) + sigmoid on the tiny maps.
# ----------------------------------------------------------------------------
def _conv_kernel(w_ref, maps_ref, o_ref, pad_ref):
    # w_ref   : SMEM (2*KSIZE*KSIZE,) f32 — flattened weight (ci major, then kh, kw)
    # maps_ref: VMEM (1, 2, H, W) f32     — [mean, max] maps for one batch element
    # o_ref   : VMEM (1, 1, H, W)
    # pad_ref : VMEM (2, H+2*PAD, W+2*PAD) f32 scratch
    H = o_ref.shape[2]
    W = o_ref.shape[3]
    Wp = W + 2 * PAD

    # Zero only the PAD border (interior is fully overwritten below).  It is
    # re-zeroed each step because the batch axis is "parallel": under a
    # multi-TensorCore split each core has its own scratch, so a once-only
    # pl.when(program_id == 0) init would leave other cores' borders garbage.
    zrow = jnp.zeros((2, PAD, Wp), jnp.float32)
    pad_ref[:, pl.ds(0, PAD), :] = zrow
    pad_ref[:, pl.ds(H + PAD, PAD), :] = zrow
    zcol = jnp.zeros((2, H, PAD), jnp.float32)
    pad_ref[:, pl.ds(PAD, H), pl.ds(0, PAD)] = zcol
    pad_ref[:, pl.ds(PAD, H), pl.ds(W + PAD, PAD)] = zcol

    # Interior = the two reduced maps.
    pad_ref[:, pl.ds(PAD, H), pl.ds(PAD, W)] = maps_ref[0].astype(jnp.float32)

    # Hoist all 98 SMEM weight reads out of the MAC stream.
    wts = [[[w_ref[ci * KSIZE * KSIZE + ki * KSIZE + kj] for kj in range(KSIZE)]
            for ki in range(KSIZE)]
           for ci in range(2)]

    # Cross-correlation (matches nn.Conv2d): one slab load per (ci, ki); the kj
    # shift is a static lane slice of the already-loaded slab.  Each (ci, ki)
    # produces an independent partial; partials are tree-summed at the end.
    parts = []
    for ci in range(2):
        for ki in range(KSIZE):
            slab = pad_ref[ci, pl.ds(ki, H), :]            # (H, W + 2*PAD)
            p = wts[ci][ki][0] * slab[:, 0:W]
            for kj in range(1, KSIZE):
                p = p + wts[ci][ki][kj] * slab[:, kj:kj + W]
            parts.append(p)
    while len(parts) > 1:
        nxt = [parts[i] + parts[i + 1] for i in range(0, len(parts) - 1, 2)]
        if len(parts) % 2:
            nxt.append(parts[-1])
        parts = nxt

    o_ref[...] = jax.nn.sigmoid(parts[0])[None, None, :, :].astype(o_ref.dtype)


def _divisors(n):
    return [d for d in range(1, n + 1) if n % d == 0]


def spatial_attention(x, weight, *, vmem_budget_bytes=12 * 1024 * 1024):
    """x: (B, C, H, W); weight: (1, 2, KSIZE, KSIZE) -> (B, 1, H, W)."""
    B, C, H, W = x.shape
    HW = H * W
    itemsize = jnp.dtype(x.dtype).itemsize

    # ---- Stage-1 tiling choices --------------------------------------------
    # Batch tile: amortize the ~0.35us/step grid overhead for tiny maps, but keep
    # >= 2 steps on the parallel axis so both v7x TensorCores get work.
    bt = 1
    for d in _divisors(B):
        if d * C * HW * itemsize <= (1 << 20) and (B // d >= 2 or d == 1):
            bt = d
    # Channel chunk: largest divisor of C that is either C itself or a multiple
    # of 8 (second-minor layout constraint) whose double-buffered input block
    # fits the VMEM budget.
    cands = [d for d in _divisors(C) if d == C or d % 8 == 0]
    fitting = [d for d in cands if 2 * bt * d * HW * itemsize <= vmem_budget_bytes]
    cc = max(fitting) if fitting else min(cands)

    # Explicit VMEM budget: double-buffered input block + double-buffered output
    # accumulator + headroom.  Default scoped limits (16 MiB v5e / 32 MiB v6e,
    # v7x) would otherwise silently cap the streaming tile.
    needed = 2 * bt * cc * HW * itemsize + 2 * bt * 2 * HW * 4 + (8 << 20)
    vmem_limit = int(min(max(needed, 32 << 20), 48 << 20))

    # Lane-dense view for the heavy read of x: H*W maps to lanes.
    x_flat = x.reshape(B, C, HW)
    maps = pl.pallas_call(
        functools.partial(_reduce_kernel, inv_c=1.0 / C),
        out_shape=jax.ShapeDtypeStruct((B, 2, HW), jnp.float32),
        grid_spec=pltpu.PrefetchScalarGridSpec(
            num_scalar_prefetch=0,
            grid=(B // bt, C // cc),                      # reduction axis last
            in_specs=[pl.BlockSpec((bt, cc, HW), lambda b, c: (b, c, 0))],
            out_specs=pl.BlockSpec((bt, 2, HW), lambda b, c: (b, 0, 0)),
        ),
        compiler_params=pltpu.CompilerParams(
            dimension_semantics=("parallel", "arbitrary"),
            vmem_limit_bytes=vmem_limit,
        ),
    )(x_flat)

    # ---- Stage 2: pad + conv + sigmoid on the tiny (B, 2, H, W) maps --------
    maps = maps.reshape(B, 2, H, W)
    w_flat = weight.reshape(-1).astype(jnp.float32)       # (2*KSIZE*KSIZE,)
    out = pl.pallas_call(
        _conv_kernel,
        out_shape=jax.ShapeDtypeStruct((B, 1, H, W), x.dtype),
        grid_spec=pltpu.PrefetchScalarGridSpec(
            num_scalar_prefetch=0,
            grid=(B,),
            in_specs=[
                pl.BlockSpec(memory_space=pltpu.MemorySpace.SMEM),     # conv weight
                pl.BlockSpec((1, 2, H, W), lambda b: (b, 0, 0, 0)),    # [mean, max]
            ],
            out_specs=pl.BlockSpec((1, 1, H, W), lambda b: (b, 0, 0, 0)),
            scratch_shapes=[pltpu.VMEM((2, H + 2 * PAD, W + 2 * PAD), jnp.float32)],
        ),
        compiler_params=pltpu.CompilerParams(dimension_semantics=("parallel",)),
    )(w_flat, maps)
    return out


def spatial_attention_ref(x, weight):
    avg = jnp.mean(x, axis=1, keepdims=True)
    mx = jnp.max(x, axis=1, keepdims=True)
    xc = jnp.concatenate([avg, mx], axis=1)
    out = jax.lax.conv_general_dilated(
        xc, weight, window_strides=(1, 1),
        padding=[(PAD, PAD), (PAD, PAD)],
        dimension_numbers=("NCHW", "OIHW", "NCHW"),
    )
    return jax.nn.sigmoid(out)


if __name__ == "__main__":
    key = jax.random.PRNGKey(0)
    kx, kw, kx2 = jax.random.split(key, 3)

    # Deterministic init matching nn.Conv2d default: U(-b, b), b = 1/sqrt(fan_in)
    fan_in = 2 * KSIZE * KSIZE
    bound = 1.0 / (fan_in ** 0.5)
    weight = jax.random.uniform(kw, (1, 2, KSIZE, KSIZE), jnp.float32, -bound, bound)

    # Primary small shape.
    B, C, H, W = 2, 4, 16, 16
    x = jax.random.normal(kx, (B, C, H, W), dtype=jnp.float32)
    out = jax.block_until_ready(spatial_attention(x, weight))
    ref = spatial_attention_ref(x, weight)
    assert out.shape == (B, 1, H, W)
    assert jnp.allclose(out, ref, rtol=1e-4, atol=1e-5), "mismatch vs reference"

    # Exercise the channel-chunked reduction path (forced tiny VMEM budget ->
    # C=16 splits into two chunks of 8, multi-step sum/max accumulation).
    x2 = jax.random.normal(kx2, (2, 16, 16, 16), dtype=jnp.float32)
    out2 = jax.block_until_ready(
        spatial_attention(x2, weight, vmem_budget_bytes=2 * 8 * 256 * 4))
    ref2 = spatial_attention_ref(x2, weight)
    assert jnp.allclose(out2, ref2, rtol=1e-4, atol=1e-5), "mismatch vs reference (chunked)"

    print("KERNEL_OK")
</pallas_src>

<mosaic_0001>
module attributes {stable_mosaic.version = 11 : i64} {
  func.func @_reduce_kernel(%arg0: i32, %arg1: i32, %arg2: memref<1x4x256xf32, #tpu.memory_space<vmem>>, %arg3: memref<1x2x256xf32, #tpu.memory_space<vmem>>) attributes {dimension_semantics = [#tpu.dimension_semantics<parallel>, #tpu.dimension_semantics<arbitrary>], iteration_bounds = array<i64: 2, 1>, scalar_prefetch = 0 : i64, scratch_operands = 0 : i64, tpu.core_type = #tpu.core_type<tc>, window_params = [{transform_indices = @transform_0, window_bounds = array<i64: 1, 4, 256>}, {transform_indices = @transform_1, window_bounds = array<i64: 1, 2, 256>}]} {
    %c0 = arith.constant 0 : index
    %c0_0 = arith.constant 0 : index
    %c0_1 = arith.constant 0 : index
    %0 = vector.load %arg2[%c0, %c0_0, %c0_1] : memref<1x4x256xf32, #tpu.memory_space<vmem>>, vector<1x4x256xf32>
    %cst = arith.constant dense<0.000000e+00> : vector<1x256xf32>
    %1 = vector.multi_reduction <add>, %0, %cst [1] : vector<1x4x256xf32> to vector<1x256xf32>
    %2 = vector.shape_cast %1 : vector<1x256xf32> to vector<1x1x256xf32>
    %cst_2 = arith.constant dense<0xFF800000> : vector<1x256xf32>
    %3 = vector.multi_reduction <maximumf>, %0, %cst_2 [1] : vector<1x4x256xf32> to vector<1x256xf32>
    %4 = vector.shape_cast %3 : vector<1x256xf32> to vector<1x1x256xf32>
    %c0_i32 = arith.constant 0 : i32
    %5 = arith.cmpi eq, %arg1, %c0_i32 : i32
    %6 = arith.extui %5 : i1 to i32
    %c0_i32_3 = arith.constant 0 : i32
    %7 = arith.cmpi ne, %6, %c0_i32_3 : i32
    scf.if %7 {
      %c0_8 = arith.constant 0 : index
      %c0_9 = arith.constant 0 : index
      %c0_10 = arith.constant 0 : index
      %14 = vector.load %arg3[%c0_8, %c0_9, %c0_10] : memref<1x2x256xf32, #tpu.memory_space<vmem>>, vector<1x1x256xf32>
      tpu.vector_store %arg3[%c0_8, %c0_9, %c0_10], %2 {strides = array<i32>} : memref<1x2x256xf32, #tpu.memory_space<vmem>>, vector<1x1x256xf32>,
      %c0_11 = arith.constant 0 : index
      %c1 = arith.constant 1 : index
      %c0_12 = arith.constant 0 : index
      %15 = vector.load %arg3[%c0_11, %c1, %c0_12] : memref<1x2x256xf32, #tpu.memory_space<vmem>>, vector<1x1x256xf32>
      tpu.vector_store %arg3[%c0_11, %c1, %c0_12], %4 {strides = array<i32>} : memref<1x2x256xf32, #tpu.memory_space<vmem>>, vector<1x1x256xf32>,
    } else {
    }
    %c0_i32_4 = arith.constant 0 : i32
    %8 = arith.cmpi sgt, %arg1, %c0_i32_4 : i32
    %9 = arith.extui %8 : i1 to i32
    %c0_i32_5 = arith.constant 0 : i32
    %10 = arith.cmpi ne, %9, %c0_i32_5 : i32
    scf.if %10 {
      %c0_8 = arith.constant 0 : index
      %c0_9 = arith.constant 0 : index
      %c0_10 = arith.constant 0 : index
      %14 = vector.load %arg3[%c0_8, %c0_9, %c0_10] : memref<1x2x256xf32, #tpu.memory_space<vmem>>, vector<1x1x256xf32>
      %15 = arith.addf %14, %2 : vector<1x1x256xf32>
      %c0_11 = arith.constant 0 : index
      %c0_12 = arith.constant 0 : index
      %c0_13 = arith.constant 0 : index
      %16 = vector.load %arg3[%c0_11, %c0_12, %c0_13] : memref<1x2x256xf32, #tpu.memory_space<vmem>>, vector<1x1x256xf32>
      tpu.vector_store %arg3[%c0_11, %c0_12, %c0_13], %15 {strides = array<i32>} : memref<1x2x256xf32, #tpu.memory_space<vmem>>, vector<1x1x256xf32>,
      %c0_14 = arith.constant 0 : index
      %c1 = arith.constant 1 : index
      %c0_15 = arith.constant 0 : index
      %17 = vector.load %arg3[%c0_14, %c1, %c0_15] : memref<1x2x256xf32, #tpu.memory_space<vmem>>, vector<1x1x256xf32>
      %18 = arith.maximumf %17, %4 : vector<1x1x256xf32>
      %c0_16 = arith.constant 0 : index
      %c1_17 = arith.constant 1 : index
      %c0_18 = arith.constant 0 : index
      %19 = vector.load %arg3[%c0_16, %c1_17, %c0_18] : memref<1x2x256xf32, #tpu.memory_space<vmem>>, vector<1x1x256xf32>
      tpu.vector_store %arg3[%c0_16, %c1_17, %c0_18], %18 {strides = array<i32>} : memref<1x2x256xf32, #tpu.memory_space<vmem>>, vector<1x1x256xf32>,
    } else {
    }
    %c0_i32_6 = arith.constant 0 : i32
    %11 = arith.cmpi eq, %arg1, %c0_i32_6 : i32
    %12 = arith.extui %11 : i1 to i32
    %c0_i32_7 = arith.constant 0 : i32
    %13 = arith.cmpi ne, %12, %c0_i32_7 : i32
    scf.if %13 {
      %c0_8 = arith.constant 0 : index
      %c0_9 = arith.constant 0 : index
      %c0_10 = arith.constant 0 : index
      %14 = vector.load %arg3[%c0_8, %c0_9, %c0_10] : memref<1x2x256xf32, #tpu.memory_space<vmem>>, vector<1x1x256xf32>
      %cst_11 = arith.constant 2.500000e-01 : f32
      %15 = vector.broadcast %cst_11 : f32 to vector<1x1x256xf32>
      %16 = arith.mulf %14, %15 : vector<1x1x256xf32>
      %c0_12 = arith.constant 0 : index
      %c0_13 = arith.constant 0 : index
      %c0_14 = arith.constant 0 : index
      %17 = vector.load %arg3[%c0_12, %c0_13, %c0_14] : memref<1x2x256xf32, #tpu.memory_space<vmem>>, vector<1x1x256xf32>
      tpu.vector_store %arg3[%c0_12, %c0_13, %c0_14], %16 {strides = array<i32>} : memref<1x2x256xf32, #tpu.memory_space<vmem>>, vector<1x1x256xf32>,
    } else {
    }
    return
  }
  func.func @transform_0(%arg0: i32, %arg1: i32) -> (i32, i32, i32) {
    %c0_i32 = arith.constant 0 : i32
    %c0_i32_0 = arith.constant 0 : i32
    return %arg0, %arg1, %c0_i32 : i32, i32, i32
  }
  func.func @transform_1(%arg0: i32, %arg1: i32) -> (i32, i32, i32) {
    %c0_i32 = arith.constant 0 : i32
    %c0_i32_0 = arith.constant 0 : i32
    %c0_i32_1 = arith.constant 0 : i32
    return %arg0, %c0_i32, %c0_i32_0 : i32, i32, i32
  }
}

</mosaic_0001>

<bundles_post_ra>
// kernel: tpu_custom_call.1
= control target key start
LH: loop header
LB: loop body
LE: loop exit
PB: predicated region body
PF: predicated region fallthrough
CT: control target
= control target key end

     0   :  { %6 = vsyncpa [#allocation3], 0  ;;  %s770_s0 = inlined_call_operand.hbm [shape: f32[2,4,256], index: 0, kind: input, shape index: {}]   ;;  %s771_s1 = inlined_call_operand.hbm [shape: f32[2,2,256], index: 1, kind: output, shape index: {}]  }
   0x1   :  { %8 = vsyncpa [#allocation3 + $0x1], 0 }
   0x2   :  { %9 = vsyncpa [#allocation4], 0 }
   0x3   :  { %11 = vsyncpa [#allocation4 + $0x1], 0  ;;  %s597_s6 = smov 0   ;;  %s599_s7 = smov 0  }
   0x4   :  { %s601_s8 = smov 0   ;;  %s603_s9 = smov 0  }
   0x5   :  { %s605_s10 = smov 0   ;;  %s607_s11 = smov 0  }
   0x6 LB: > { %s386_s12 = sadd.s32 4294967295, %s582_s11   ;;  %s387_s13 = sadd.s32 4294967294, %s582_s11   ;;  %s582_s11 = sphi %s607_s11, %s17_s11   ;;  %s578_s10 = sphi %s605_s10, %s787_s10   ;;  %s574_s9 = sphi %s603_s9, %s786_s9   ;;  %s570_s8 = sphi %s601_s8, %s785_s8   ;;  %s566_s7 = sphi %s599_s7, %s784_s7   ;;  %s562_s6 = sphi %s597_s6, %s783_s6  }
   0x7   : > { %s29_s14 = sadd.s32 1, %s578_s10  ;;  %s38_s15 = sadd.s32 1, %s570_s8 }
   0x8   : > { %p31_p0 = scmp.ge.s32.totalorder %s29_s14, 2  ;;  %p45_p1 = scmp.ne.s32.totalorder %s570_s8, %s566_s7 }
   0x9   : > { %p46_p2 = scmp.eq.s32.totalorder %s582_s11, 0  ;;  %p51_p3 = scmp.ne.s32.totalorder %s566_s7, %s562_s6 }
   0xa   : > { %s789_s14 = smov (%p31_p0, %s29_s14), 0  ;;  %p52_p5 = scmp.eq.s32.totalorder %s386_s12, 0 }
   0xb   : > { %p638_p4 = por %p46_p2, %p45_p1  ;;  %s33_s17 = ssub.s32 %s578_s10, %s789_s14 }
   0xc   : > { %p75_p6 = scmp.eq.s32.totalorder %s386_s12, 1  ;;  %p36_p7 = scmp.eq.s32.totalorder %s33_s17, 0 }
   0xd   : > { %p644_p8 = por %p52_p5, %p51_p3  ;;  %p81_p10 = scmp.eq.s32.totalorder %s387_s13, 1 }
   0xe   : > { %p648_p9 = por %p75_p6, %p45_p1  ;;  %p418_p13 = scmp.lt.s32.totalorder %s582_s11, 2 }
   0xf   : > { %s653_s20 = scalar_select %p36_p7, %s570_s8, %s38_s15  }
  0x10   : > { %s775_s19 = scalar_select %p648_p9, 1, 0 }
  0x11   : > { %p655_p11 = por %p81_p10, %p51_p3  ;;  %s101_s22 = sand.u32 1, %s570_s8  }
  0x12   : > { %s390_s23 = sshll.u32 %s101_s22, 3  ;;  %s404_s24 = sshll.u32 %s578_s10, 7 }
  0x13   : > { %s776_s21 = scalar_select %p655_p11, 1, 0 }
  0x14   : > { %s666_s27 = scalar_lea.hbm %s770_s0, %s404_s24  ;;  %s105_s28 = scalar_lea.vmem [#allocation2], %s390_s23 }
  0x15   : > { %s115_s29 = sshll.u32 %s105_s28, 4  ;;  %p672_p0 = pnand %p418_p13, %p638_p4  ;;  %s668_s29 = int_to_ptr.vmem [resolvable:$true] %s115_s29 }
  0x16   : > { %s102_s2 = scalar_lea.sflag [#allocation3], %s101_s22  ;;  %s470_s3 = scalar_lea.hbm %s666_s27, 128 }
  0x17   : > { %p471_p3 = scmp.ne.s32.totalorder %s666_s27, %s470_s3  ;;  %p472_p5 = pneg %p672_p0 }
  0x18   : > { %s475_s12 = scalar_lea.hbm %s770_s0, 256  ;;  %p476_p4 = scmp.lt.u32.totalorder %s666_s27, %s770_s0 }
  0x19   : > { %p473_p6 = pnand %p472_p5, %p471_p3  ;;  %p477_p10 = scmp.lt.u32.totalorder %s475_s12, %s470_s3 }
  0x1a   : > { %p479_p12 = scmp.lt.u32.totalorder %s470_s3, %s666_s27 }
  0x1b   : > { %p474_p7 = pneg %p473_p6  ;;  %p478_p13 = por %p477_p10, %p476_p4 }
  0x1d   : > { %p480_p1 = por %p479_p12, %p478_p13 }
  0x1f   : > { %p481_p2 = pnand %p480_p1, %p474_p7 }
  0x21   : > { %484 = shalt.err (!%p481_p2)
}
  0x22   : > { %s485_s16 = scalar_lea.vmem %s668_s29, 128  ;;  %s584_s17 = smov [#allocation2]  }
  0x23   : > { %p486_p3 = scmp.ne.s32.totalorder %s668_s29, %s485_s16  ;;  %s490_s22 = sshll.u32 %s584_s17, 4  ;;  %s491_s22 = int_to_ptr.vmem [resolvable:$false] %s490_s22 }
  0x24   : > { %s492_s23 = scalar_lea.vmem %s491_s22, 256  ;;  %p493_p9 = scmp.lt.s32.totalorder %s668_s29, %s491_s22 }
  0x25   : > { %p488_p6 = pnand %p486_p3, %p472_p5  ;;  %p494_p4 = scmp.lt.s32.totalorder %s492_s23, %s485_s16 }
  0x27   : > { %p489_p11 = pneg %p488_p6  ;;  %p495_p10 = por %p494_p4, %p493_p9 }
  0x29   : > { %p496_p12 = pnand %p495_p10, %p489_p11 }
  0x2b   : > { %499 = shalt.err (!%p496_p12)
}
  0x2c   : > { %413 = dma.hbm_to_vmem [thread:$0]  (!%p672_p0), %s666_s27, 128, %s668_s29, %s102_s2  }
  0x2d   : > { %p778_p1 = scmp.lt.s32.totalorder %s582_s11, 3  ;;  %p779_p2 = scmp.ge.s32.totalorder %s582_s11, 1 }
  0x2f   : > { %p121_p5 = pnand %p779_p2, %p778_p1 }
  0x30   : > { %s708_s24 = sand.u32 (!%p121_p5), 1, %s566_s7  }
  0x31   : > { %124 = sbr.rel (%p121_p5) target bundleno = 103 (0x67), region = 24  ;;  %s394_s25 = sshll.u32 (!%p121_p5), %s708_s24, 3 }
  0x32   : > { %s127_s26 = scalar_lea.sflag (!%p121_p5), [#allocation3], %s708_s24  ;;  %s130_s28 = scalar_lea.vmem (!%p121_p5), [#allocation2], %s394_s25 }
  0x38   : > { %553 = dma.done.wait (%p644_p8), %s127_s26, 128  }
  0x39   : > { %555 = vsyncadd (%p644_p8), %s127_s26, 4294967168  ;;  %vm153_vm0 = vcmask 1043456   ;;  %v149_v0 = vld [vmem:[%s130_s28] sm:$0xff]  ;;  %v585_v12 = vmov 1966171168   ;;  %v192_v14 = vlaneseq  ;;  %s395_s18 = sshll.u32 %s708_s24, 2 }
  0x3a   : > { %v151_v1 = vcombine.high %v149_v0, %v149_v0  ;;  %v154_v2 = vsel %vm153_vm0, %v149_v0, 0.0  ;;  %v168_v3 = vsel %vm153_vm0, %v149_v0, -inf  ;;  %v190_v13 = vunpack.c.l.s4 %v585_v12  ;;  %s148_s27 = scalar_lea.vmem [#allocation5], %s395_s18  ;;  %s405_s29 = sshll.u32 %s574_s9, 6 }
  0x3b   : > { %v155_v4 = vrot.slane %v154_v2, 4  ;;  %v169_v5 = vrot.slane %v168_v3, 4  ;;  %v193_v24 = vshrl.u32 %v192_v14, 7  ;;  %vm206_vm1 = vcmp.lt.s32.totalorder %v192_v14, 256  ;;  %s305_s30 = sshll.u32 %s148_s27, 4  ;;  %s721_s4 = scalar_lea.hbm %s771_s1, %s405_s29  ;;  %s723_s30 = int_to_ptr.vmem [resolvable:$true] %s305_s30 }
  0x3c   : > { %v161_v6 = vsel %vm153_vm0, %v151_v1, 0.0  ;;  %v175_v7 = vsel %vm153_vm0, %v151_v1, -inf  ;;  %v191_v23 = vunpack.c.0.s8 %v190_v13  ;;  %s291_s5 = scalar_lea.sflag [#allocation4], %s708_s24  ;;  %s500_s12 = scalar_lea.vmem %s723_s30, 64 }
  0x3d   : > { %v156_v8 = vadd.f32 %v155_v4, %v154_v2  ;;  %v162_v9 = vrot.slane %v161_v6, 4  ;;  %v170_v10 = vmax.f32 %v168_v3, %v169_v5  ;;  %v176_v11 = vrot.slane %v175_v7, 4  ;;  %p501_p8 = scmp.ne.s32.totalorder %s723_s30, %s500_s12  ;;  %p780_p9 = scmp.ne.s32.totalorder %s775_s19, 0 }
  0x3e   : > { %v194_v34 = vsub.s32 %v191_v23, %v193_v24  ;;  %s586_s9 = smov [#allocation5]  }
  0x3f   : > { %v157_v15 = vrot.slane %v156_v8, 2  ;;  %v163_v16 = vadd.f32 %v162_v9, %v161_v6  ;;  %v171_v17 = vrot.slane %v170_v10, 2  ;;  %v177_v18 = vmax.f32 %v175_v7, %v176_v11  ;;  %p502_p11 = pnand %p501_p8, %p780_p9  ;;  %s504_s13 = sshll.u32 %s586_s9, 4  ;;  %s505_s13 = int_to_ptr.vmem [resolvable:$false] %s504_s13 }
  0x40   : > { %s506_s15 = scalar_lea.vmem %s505_s13, 128  ;;  %p507_p7 = scmp.lt.s32.totalorder %s723_s30, %s505_s13 }
  0x41   : > { %v158_v19 = vadd.f32 %v157_v15, %v156_v8  ;;  %v164_v20 = vrot.slane %v163_v16, 2  ;;  %v172_v21 = vmax.f32 %v170_v10, %v171_v17  ;;  %v178_v22 = vrot.slane %v177_v18, 2  ;;  %p503_p0 = pneg %p502_p11  ;;  %p508_p13 = scmp.lt.s32.totalorder %s506_s15, %s500_s12 }
  0x43   : > { %v159_v25 = vrot.slane %v158_v19, 1  ;;  %v165_v26 = vadd.f32 %v164_v20, %v163_v16  ;;  %v173_v27 = vrot.slane %v172_v21, 1  ;;  %v179_v28 = vmax.f32 %v177_v18, %v178_v22  ;;  %p509_p3 = por %p508_p13, %p507_p7 }
  0x45   : > { %v160_v29 = vadd.f32 %v159_v25, %v158_v19  ;;  %v166_v30 = vrot.slane %v165_v26, 1  ;;  %v174_v31 = vmax.f32 %v172_v21, %v173_v27  ;;  %v180_v32 = vrot.slane %v179_v28, 1  ;;  %p510_p6 = pnand %p509_p3, %p503_p0 }
  0x47   : > { %v167_v33 = vadd.f32 %v166_v30, %v165_v26  ;;  %v181_v35 = vmax.f32 %v179_v28, %v180_v32 }
  0x49   : > { %v188_v36 = vcombine.low %v160_v29, %v167_v33  ;;  %v211_v37 = vcombine.low %v174_v31, %v181_v35 }
  0x4b   : > { %v195_v38 = vrot.slane %v188_v36, %v194_v34  ;;  %v218_v39 = vrot.slane %v211_v37, %v194_v34 }
  0x4d   : > { %v202_v40 = vrot.slane %v195_v38, %v194_v34  ;;  %v225_v41 = vrot.slane %v218_v39, %v194_v34 }
  0x4f   : > { %208 = vst.msk [vmem:[%s148_s27] ss:$2 sm:$0x3] %vm206_vm1, %v202_v40  ;;  %396 = vst.msk [vmem:[%s148_s27 + $0x1] ss:$2 sm:$0x3] %vm206_vm1, %v225_v41 }
  0x56   : > { %v283_v42 = vld [vmem:[%s148_s27] ss:$2 sm:$0x3] }
  0x57   : > { %v284_v43 = vmul.f32 0.25, %v283_v42 }
  0x59   : > { %289 = vst.msk [vmem:[%s148_s27] ss:$2 sm:$0x3] %vm206_vm1, %v284_v43 }
  0x5a   : > { %513 = shalt.err (!%p510_p6)
}
  0x5b   : > { %s514_s16 = scalar_lea.hbm %s721_s4, 64  ;;  %s518_s23 = scalar_lea.hbm %s771_s1, 128 }
  0x5c   : > { %p515_p4 = scmp.ne.s32.totalorder %s721_s4, %s514_s16  ;;  %p519_p1 = scmp.lt.u32.totalorder %s721_s4, %s771_s1 }
  0x5d   : > { %p520_p2 = scmp.lt.u32.totalorder %s518_s23, %s514_s16  ;;  %p522_p8 = scmp.lt.u32.totalorder %s514_s16, %s721_s4 }
  0x5e   : > { %p516_p10 = pnand %p515_p4, %p780_p9 }
  0x5f   : > { %p521_p5 = por %p520_p2, %p519_p1 }
  0x60   : > { %p517_p12 = pneg %p516_p10 }
  0x61   : > { %p523_p11 = por %p522_p8, %p521_p5 }
  0x63   : > { %p524_p0 = pnand %p523_p11, %p517_p12 }
  0x65   : > { %527 = shalt.err (!%p524_p0)
}
  0x66   : > { %408 = dma.vmem_to_hbm [thread:$0]  (%p780_p9), %s723_s30, 64, %s721_s4, %s291_s5  }
  0x67 PF: > { %s317_s26 = sand.u32 1, %s562_s6   ;;  %p781_p7 = scmp.ne.s32.totalorder %s776_s21, 0 }
  0x68   : > { %p782_p13 = scmp.ge.s32.totalorder %s582_s11, 2  ;;  %s318_s28 = scalar_lea.sflag [#allocation4], %s317_s26 }
  0x6a   : > { %p415_p3 = pnand %p782_p13, %p781_p7 }
  0x6c   : > { %557 = dma.done.wait (!%p415_p3), %s318_s28, 64  }
  0x6d   : > { %559 = vsyncadd (!%p415_p3), %s318_s28, 4294967232  ;;  %s17_s11 = sadd.s32 1, %s582_s11   ;;  %s783_s6 = smov %s566_s7 }
  0x6e   : > { %p14_p6 = scmp.ge.s32.totalorder %s17_s11, 4   ;;  %s784_s7 = smov %s570_s8 }
  0x6f   : > { %s785_s8 = smov %s653_s20  ;;  %s786_s9 = smov %s578_s10 }
  0x70   : > { %s787_s10 = smov %s789_s14  ;;  %16 = sbr.rel (!%p14_p6) target bundleno = 6 (0x6), region = 83 }
  0x77   :  { %323 = vsyncpa [#allocation3], 1 }
  0x78   :  { %325 = vsyncpa [#allocation3 + $0x1], 1 }
  0x79   :  { %326 = vsyncpa [#allocation4], 1 }
  0x7a   :  { %328 = vsyncpa [#allocation4 + $0x1], 1 }

</bundles_post_ra>
